<compile_context>
chip_gen: v7x
topology: tpu7x:2x2x1
jax: 0.10.0
libtpu: 0.0.40
codegen_flags: <defaults>
</compile_context>

<pallas_src>
import math

import jax
import jax.numpy as jnp
from jax import lax
from jax.experimental import pallas as pl
from jax.experimental.pallas import tpu as pltpu


_TILE_MAX = 2048            # max lanes per reduction step (keep the pipeline deep)
_TILE_MIN_FOR_BW = 512      # ~85% of HBM roofline already at 512-lane tiles
_ROW_BLOCK_CAP = 256        # max rows resident per grid step
_INPUT_BYTE_BUDGET = 4 << 20  # all (K+1) input streams, one pipeline buffer deep
# Review #10: sweep 3 (pl.Buffered(3)) once measured on real HW; left at the
# default double-buffering here because the win is a few percent and deeper
# buffering costs VMEM.
_INPUT_BUFFERS = 2


def _round_up(x, m):
    return ((x + m - 1) // m) * m


def _vmem_capacity_bytes():
    try:
        info = pltpu.get_tpu_info()
        cap = getattr(info, "vmem_capacity_bytes", None)
        if cap:
            return int(cap)
    except Exception:
        pass
    return 64 * 1024 * 1024  # conservative default (v7x per-core VMEM)


def _num_tensorcores():
    # v7x has 2 TensorCores per chip; v5e/v6e have 1.  An extra partition on a
    # 1-TC chip just iterates sequentially, so defaulting to 2 is harmless.
    try:
        info = pltpu.get_tpu_info()
        for name in ("num_tensorcores", "tensorcore_count", "num_cores",
                     "cores_per_chip", "core_count"):
            v = getattr(info, name, None)
            if isinstance(v, int) and v > 0:
                return max(1, min(v, 8))
    except Exception:
        pass
    return 2


def _pick_row_block(R):
    """Largest divisor of R that is a multiple of 8 and <= the cap (else R)."""
    if R <= _ROW_BLOCK_CAP:
        return R
    for rb in range(_ROW_BLOCK_CAP, 7, -8):
        if R % rb == 0:
            return rb
    return R


def _fold_factor(R, S, pack, max_f=64):
    """Smallest f with (R*f) % pack == 0 and S % f == 0 (sublane folding)."""
    if R % pack == 0:
        return 1
    f0 = pack // math.gcd(R, pack)
    f = f0
    while f <= max_f:
        if S % f == 0:
            return f
        f += f0
    return 1


def _make_in_spec(block, index_map):
    if _INPUT_BUFFERS != 2:
        try:
            return pl.BlockSpec(block, index_map,
                                pipeline_mode=pl.Buffered(_INPUT_BUFFERS))
        except Exception:
            pass
    return pl.BlockSpec(block, index_map)


def _make_dice_kernel(K, S, tile, rb, n_per_part, n_tiles, has_phantom):
    """Kernel refs: [t, o_0..o_{K-1}, out, tt_acc, ot_0, oo_0, ..., ot_{K-1}, oo_{K-1}].

    Hot loop: element-wise VPU multiply-accumulate into lane-dense f32 scratch.
    The 2K+1 cross-lane reductions and the single merged output write happen
    only on the last reduction step of each partition / row-block.
    """
    ragged = (S % tile) != 0
    n_full = n_tiles - 1 if ragged else n_tiles        # tiles needing no mask
    rem = S - (n_tiles - 1) * tile                     # valid lanes of tail tile

    def kernel(*refs):
        t_ref = refs[0]
        o_refs = refs[1:1 + K]
        out_ref = refs[1 + K]
        acc_refs = refs[2 + K:]            # tt, ot_0, oo_0, ot_1, oo_1, ...

        p = pl.program_id(0)
        k = pl.program_id(2)
        gk = p * n_per_part + k            # global lane-tile index

        @pl.when(k == 0)
        def _init():
            for a in acc_refs:
                a[...] = jnp.zeros_like(a)

        def accumulate(select):
            t = select(t_ref[...].astype(jnp.float32))
            acc_refs[0][...] += t * t
            for i in range(K):
                o = select(o_refs[i][...].astype(jnp.float32))
                acc_refs[1 + 2 * i][...] += o * t
                acc_refs[2 + 2 * i][...] += o * o

        if not ragged and not has_phantom:
            # Every tile is full and valid: mask-free, predicate-free hot path.
            accumulate(lambda x: x)
        else:
            if n_full > 0:
                @pl.when(gk < n_full)
                def _full():
                    accumulate(lambda x: x)

            if ragged:
                @pl.when(gk == n_tiles - 1)
                def _tail():
                    # Boundary tile only.  OOB lanes are undefined (NaN in
                    # interpret mode): zero them with a SELECT — a 0/1
                    # multiply would give 0*NaN = NaN and poison the sums.
                    lane = lax.broadcasted_iota(jnp.int32, (rb, tile), 1)
                    valid = lane < rem
                    accumulate(lambda x: jnp.where(valid, x, 0.0))
            # Phantom steps (gk >= n_tiles) fall through and accumulate nothing.

        @pl.when(k == n_per_part - 1)
        def _flush():
            cols = [jnp.sum(a[...], axis=-1, keepdims=True) for a in acc_refs]
            out_ref[...] = jnp.concatenate(cols, axis=-1)[None]

    return kernel


def _dice_sums_fused(target2, outputs2):
    """target2: (R, S); outputs2: list of K (R, S) arrays.

    Returns an (R, 2K+1) f32 array with, per row:
      [:, 0]       = sum(t*t)
      [:, 1 + 2i]  = sum(o_i * t)
      [:, 2 + 2i]  = sum(o_i * o_i)
    reduced over the lane (spatial) axis.  Single fused pass: HBM traffic is
    (K+1)|X| and sum(t*t) is computed once.
    """
    R, S = target2.shape
    K = len(outputs2)
    itemsize = max(x.dtype.itemsize for x in (target2, *outputs2))

    # --- row blocking: bound the resident rows so lane tiles stay wide and the
    #     per-step VMEM footprint stays bounded for large N*C. ---
    rb = _pick_row_block(R)
    n_rb = R // rb

    # --- lane tile: small enough that the reduction axis has many grid steps
    #     (software pipelining), big enough to stay near the HBM roofline.
    #     One config fits all generations. ---
    tile_budget = max(128, (_INPUT_BYTE_BUDGET // ((K + 1) * rb * itemsize)) // 128 * 128)
    P = _num_tensorcores()
    tile_steps = max(_TILE_MIN_FOR_BW, _round_up(-(-S // (8 * P)), 128))
    tile = min(_TILE_MAX, tile_budget, tile_steps, _round_up(S, 128))

    n_tiles = -(-S // tile)

    # --- megacore partitioning of the reduction: cdiv split; the short
    #     partition's phantom steps are skipped in-kernel. Harmless on 1 TC. ---
    P = max(1, min(P, n_tiles))
    n_per_part = -(-n_tiles // P)
    has_phantom = (P * n_per_part != n_tiles)

    if has_phantom:
        lane_idx = lambda p, r, k: (r, jnp.minimum(p * n_per_part + k, n_tiles - 1))
    else:
        lane_idx = lambda p, r, k: (r, p * n_per_part + k)

    in_spec = _make_in_spec((rb, tile), lane_idx)
    # Single merged output, written once per (partition, row-block): (P, R, 2K+1).
    out_spec = pl.BlockSpec((1, rb, 2 * K + 1), lambda p, r, k: (p, r, 0))
    out_shape = jax.ShapeDtypeStruct((P, R, 2 * K + 1), jnp.float32)

    # --- VMEM budget: double-buffered inputs + resident f32 accumulators +
    #     f32 cast temporaries + output blocks, capped at ~85% of physical. ---
    vmem_cap = _vmem_capacity_bytes()
    footprint = ((K + 1) * 2 * rb * tile * itemsize      # inputs, 2 buffers each
                 + (2 * K + 1) * rb * tile * 4           # f32 accumulators
                 + (K + 2) * rb * tile * 4               # f32 cast / product temps
                 + 2 * P * rb * (2 * K + 1) * 4)         # output blocks
    vmem_limit = max(32 << 20, min(int(0.85 * vmem_cap), footprint + (8 << 20)))

    kernel = _make_dice_kernel(K, S, tile, rb, n_per_part, n_tiles, has_phantom)

    res = pl.pallas_call(
        kernel,
        out_shape=out_shape,
        grid_spec=pltpu.PrefetchScalarGridSpec(
            num_scalar_prefetch=0,
            grid=(P, n_rb, n_per_part),
            in_specs=[in_spec] * (K + 1),
            out_specs=out_spec,
            scratch_shapes=[pltpu.VMEM((rb, tile), jnp.float32)
                            for _ in range(2 * K + 1)],
        ),
        compiler_params=pltpu.CompilerParams(
            dimension_semantics=("parallel", "parallel", "arbitrary"),
            vmem_limit_bytes=vmem_limit,
        ),
    )(target2, *outputs2)

    return res.sum(axis=0)        # combine the P partial partitions -> (R, 2K+1)


def _dice_loss_impl(outputs, target, smooth=1.0):
    """outputs: list of (N, C, D, H, W) arrays; target: (N, C, D, H, W).
    Matches DiceLoss.forward semantics exactly; the tiny per-(n,c) dice combine
    and the final mean stay in plain JAX."""
    outputs = list(outputs)
    K = len(outputs)
    N, C = int(target.shape[0]), int(target.shape[1])
    R = N * C
    S = 1
    for d in target.shape[2:]:
        S *= int(d)
    for o in outputs:
        assert o.shape == target.shape, "deep-supervision outputs must match target shape"

    # Sublane folding: if R is not a multiple of the sublane pack (8 for 4-byte,
    # 16 for 2-byte dtypes), fold spatial into rows so no sublanes are wasted.
    min_itemsize = min(x.dtype.itemsize for x in (target, *outputs))
    pack = max(8, 32 // max(1, min_itemsize))
    f = _fold_factor(R, S, pack)
    Rf, Sf = R * f, S // f

    t2 = target.reshape(Rf, Sf)
    outs2 = [o.reshape(Rf, Sf) for o in outputs]

    sums = _dice_sums_fused(t2, outs2)            # (Rf, 2K+1) f32
    if f > 1:
        sums = sums.reshape(R, f, 2 * K + 1).sum(axis=1)   # re-sum folded sub-rows

    tt = sums[:, 0].reshape(N, C)
    dice = 0.0
    for i in range(K):
        ot = sums[:, 1 + 2 * i].reshape(N, C)
        oo = sums[:, 2 + 2 * i].reshape(N, C)
        dice = dice + jnp.sum(2.0 * ot / (oo + tt + smooth), axis=1)   # (N,)
    dice = dice / K
    return 1.0 - jnp.mean(dice)


dice_loss = jax.jit(_dice_loss_impl)


def _dice_loss_ref(outputs, target, smooth=1.0):
    # pure-JAX reference mirroring the PyTorch code
    dice = 0.0
    for output in outputs:
        for i in range(output.shape[1]):
            o = output[:, i].astype(jnp.float32)
            t = target[:, i].astype(jnp.float32)
            num = 2.0 * (o * t).sum(axis=(1, 2, 3))
            den = (o ** 2).sum(axis=(1, 2, 3)) + (t ** 2).sum(axis=(1, 2, 3)) + smooth
            dice = dice + num / den
    dice = dice / len(outputs)
    return 1.0 - jnp.mean(dice)


if __name__ == "__main__":
    key = jax.random.PRNGKey(0)
    k1, k2, k3, k4, k5 = jax.random.split(key, 5)

    def run_case(name, outputs, target, rtol, atol):
        loss = jax.block_until_ready(dice_loss(outputs, target))
        ref = jax.block_until_ready(_dice_loss_ref(outputs, target))
        assert bool(jnp.isfinite(loss)), (name, loss)
        assert jnp.allclose(loss, ref, rtol=rtol, atol=atol), (name, loss, ref)

    # 1) lane-aligned spatial size (S = 512): mask-free hot path
    N, C, D, H, W = 2, 4, 8, 8, 8
    out1 = jax.nn.sigmoid(jax.random.normal(k1, (N, C, D, H, W), jnp.float32))
    out2 = jax.nn.sigmoid(jax.random.normal(k2, (N, C, D, H, W), jnp.float32))
    target = (jax.random.uniform(k3, (N, C, D, H, W)) > 0.5).astype(jnp.float32)
    run_case("aligned_f32", [out1, out2], target, 1e-5, 1e-5)

    # 2) ragged spatial size (S = 600): boundary-tile select mask (the v2 NaN case)
    D2, H2, W2 = 6, 10, 10
    out1b = jax.nn.sigmoid(jax.random.normal(k4, (N, C, D2, H2, W2), jnp.float32))
    out2b = jax.nn.sigmoid(jax.random.normal(k1, (N, C, D2, H2, W2), jnp.float32))
    targetb = (jax.random.uniform(k2, (N, C, D2, H2, W2)) > 0.5).astype(jnp.float32)
    run_case("ragged_f32", [out1b, out2b], targetb, 1e-5, 1e-5)

    # 3) bf16 streaming (halves HBM bytes; exercises sublane folding 8 -> 16 rows)
    run_case("bf16", [out1.astype(jnp.bfloat16), out2.astype(jnp.bfloat16)],
             target.astype(jnp.bfloat16), 1e-3, 1e-3)

    # 4) R = N*C not a multiple of 8: f32 sublane folding (6 -> 24 rows), tiny lanes
    C3, D3, H3, W3 = 3, 4, 8, 8
    out1c = jax.nn.sigmoid(jax.random.normal(k5, (N, C3, D3, H3, W3), jnp.float32))
    targetc = (jax.random.uniform(k3, (N, C3, D3, H3, W3)) > 0.5).astype(jnp.float32)
    run_case("fold_f32", [out1c], targetc, 1e-5, 1e-5)

    # 5) odd lane-tile count (S = 1536 -> 3 tiles of 512): cdiv megacore split
    #    with a skipped phantom step on the short partition
    D5, H5, W5 = 6, 16, 16
    out1d = jax.nn.sigmoid(jax.random.normal(k2, (N, C, D5, H5, W5), jnp.float32))
    out2d = jax.nn.sigmoid(jax.random.normal(k3, (N, C, D5, H5, W5), jnp.float32))
    targetd = (jax.random.uniform(k4, (N, C, D5, H5, W5)) > 0.5).astype(jnp.float32)
    run_case("phantom_split_f32", [out1d, out2d], targetd, 1e-5, 1e-5)

    print("KERNEL_OK")
</pallas_src>

<mosaic_0001>
module attributes {stable_mosaic.version = 11 : i64} {
  func.func @kernel(%arg0: i32, %arg1: i32, %arg2: i32, %arg3: memref<8x512xf32, #tpu.memory_space<vmem>>, %arg4: memref<8x512xf32, #tpu.memory_space<vmem>>, %arg5: memref<8x512xf32, #tpu.memory_space<vmem>>, %arg6: memref<1x8x5xf32, #tpu.memory_space<vmem>>, %arg7: memref<8x512xf32, #tpu.memory_space<vmem>>, %arg8: memref<8x512xf32, #tpu.memory_space<vmem>>, %arg9: memref<8x512xf32, #tpu.memory_space<vmem>>, %arg10: memref<8x512xf32, #tpu.memory_space<vmem>>, %arg11: memref<8x512xf32, #tpu.memory_space<vmem>>) attributes {dimension_semantics = [#tpu.dimension_semantics<parallel>, #tpu.dimension_semantics<parallel>, #tpu.dimension_semantics<arbitrary>], iteration_bounds = array<i64: 1, 1, 1>, scalar_prefetch = 0 : i64, scratch_operands = 5 : i64, tpu.core_type = #tpu.core_type<tc>, window_params = [{transform_indices = @transform_0, window_bounds = array<i64: 8, 512>}, {transform_indices = @transform_1, window_bounds = array<i64: 8, 512>}, {transform_indices = @transform_2, window_bounds = array<i64: 8, 512>}, {transform_indices = @transform_3, window_bounds = array<i64: 1, 8, 5>}]} {
    %c0_i32 = arith.constant 0 : i32
    %0 = arith.cmpi eq, %arg2, %c0_i32 : i32
    %1 = arith.extui %0 : i1 to i32
    %c0_i32_0 = arith.constant 0 : i32
    %2 = arith.cmpi ne, %1, %c0_i32_0 : i32
    scf.if %2 {
      %cst = arith.constant 0.000000e+00 : f32
      %29 = vector.broadcast %cst : f32 to vector<8x512xf32>
      %c0_28 = arith.constant 0 : index
      %c0_29 = arith.constant 0 : index
      %30 = vector.load %arg7[%c0_28, %c0_29] : memref<8x512xf32, #tpu.memory_space<vmem>>, vector<8x512xf32>
      tpu.vector_store %arg7[%c0_28, %c0_29], %29 {strides = array<i32>} : memref<8x512xf32, #tpu.memory_space<vmem>>, vector<8x512xf32>,
      %cst_30 = arith.constant 0.000000e+00 : f32
      %31 = vector.broadcast %cst_30 : f32 to vector<8x512xf32>
      %c0_31 = arith.constant 0 : index
      %c0_32 = arith.constant 0 : index
      %32 = vector.load %arg8[%c0_31, %c0_32] : memref<8x512xf32, #tpu.memory_space<vmem>>, vector<8x512xf32>
      tpu.vector_store %arg8[%c0_31, %c0_32], %31 {strides = array<i32>} : memref<8x512xf32, #tpu.memory_space<vmem>>, vector<8x512xf32>,
      %cst_33 = arith.constant 0.000000e+00 : f32
      %33 = vector.broadcast %cst_33 : f32 to vector<8x512xf32>
      %c0_34 = arith.constant 0 : index
      %c0_35 = arith.constant 0 : index
      %34 = vector.load %arg9[%c0_34, %c0_35] : memref<8x512xf32, #tpu.memory_space<vmem>>, vector<8x512xf32>
      tpu.vector_store %arg9[%c0_34, %c0_35], %33 {strides = array<i32>} : memref<8x512xf32, #tpu.memory_space<vmem>>, vector<8x512xf32>,
      %cst_36 = arith.constant 0.000000e+00 : f32
      %35 = vector.broadcast %cst_36 : f32 to vector<8x512xf32>
      %c0_37 = arith.constant 0 : index
      %c0_38 = arith.constant 0 : index
      %36 = vector.load %arg10[%c0_37, %c0_38] : memref<8x512xf32, #tpu.memory_space<vmem>>, vector<8x512xf32>
      tpu.vector_store %arg10[%c0_37, %c0_38], %35 {strides = array<i32>} : memref<8x512xf32, #tpu.memory_space<vmem>>, vector<8x512xf32>,
      %cst_39 = arith.constant 0.000000e+00 : f32
      %37 = vector.broadcast %cst_39 : f32 to vector<8x512xf32>
      %c0_40 = arith.constant 0 : index
      %c0_41 = arith.constant 0 : index
      %38 = vector.load %arg11[%c0_40, %c0_41] : memref<8x512xf32, #tpu.memory_space<vmem>>, vector<8x512xf32>
      tpu.vector_store %arg11[%c0_40, %c0_41], %37 {strides = array<i32>} : memref<8x512xf32, #tpu.memory_space<vmem>>, vector<8x512xf32>,
    } else {
    }
    %c0 = arith.constant 0 : index
    %c0_1 = arith.constant 0 : index
    %3 = vector.load %arg3[%c0, %c0_1] : memref<8x512xf32, #tpu.memory_space<vmem>>, vector<8x512xf32>
    %c0_2 = arith.constant 0 : index
    %c0_3 = arith.constant 0 : index
    %4 = vector.load %arg7[%c0_2, %c0_3] : memref<8x512xf32, #tpu.memory_space<vmem>>, vector<8x512xf32>
    %5 = arith.mulf %3, %3 : vector<8x512xf32>
    %6 = arith.addf %4, %5 : vector<8x512xf32>
    %c0_4 = arith.constant 0 : index
    %c0_5 = arith.constant 0 : index
    %7 = vector.load %arg7[%c0_4, %c0_5] : memref<8x512xf32, #tpu.memory_space<vmem>>, vector<8x512xf32>
    tpu.vector_store %arg7[%c0_4, %c0_5], %6 {strides = array<i32>} : memref<8x512xf32, #tpu.memory_space<vmem>>, vector<8x512xf32>,
    %c0_6 = arith.constant 0 : index
    %c0_7 = arith.constant 0 : index
    %8 = vector.load %arg4[%c0_6, %c0_7] : memref<8x512xf32, #tpu.memory_space<vmem>>, vector<8x512xf32>
    %c0_8 = arith.constant 0 : index
    %c0_9 = arith.constant 0 : index
    %9 = vector.load %arg8[%c0_8, %c0_9] : memref<8x512xf32, #tpu.memory_space<vmem>>, vector<8x512xf32>
    %10 = arith.mulf %8, %3 : vector<8x512xf32>
    %11 = arith.addf %9, %10 : vector<8x512xf32>
    %c0_10 = arith.constant 0 : index
    %c0_11 = arith.constant 0 : index
    %12 = vector.load %arg8[%c0_10, %c0_11] : memref<8x512xf32, #tpu.memory_space<vmem>>, vector<8x512xf32>
    tpu.vector_store %arg8[%c0_10, %c0_11], %11 {strides = array<i32>} : memref<8x512xf32, #tpu.memory_space<vmem>>, vector<8x512xf32>,
    %c0_12 = arith.constant 0 : index
    %c0_13 = arith.constant 0 : index
    %13 = vector.load %arg9[%c0_12, %c0_13] : memref<8x512xf32, #tpu.memory_space<vmem>>, vector<8x512xf32>
    %14 = arith.mulf %8, %8 : vector<8x512xf32>
    %15 = arith.addf %13, %14 : vector<8x512xf32>
    %c0_14 = arith.constant 0 : index
    %c0_15 = arith.constant 0 : index
    %16 = vector.load %arg9[%c0_14, %c0_15] : memref<8x512xf32, #tpu.memory_space<vmem>>, vector<8x512xf32>
    tpu.vector_store %arg9[%c0_14, %c0_15], %15 {strides = array<i32>} : memref<8x512xf32, #tpu.memory_space<vmem>>, vector<8x512xf32>,
    %c0_16 = arith.constant 0 : index
    %c0_17 = arith.constant 0 : index
    %17 = vector.load %arg5[%c0_16, %c0_17] : memref<8x512xf32, #tpu.memory_space<vmem>>, vector<8x512xf32>
    %c0_18 = arith.constant 0 : index
    %c0_19 = arith.constant 0 : index
    %18 = vector.load %arg10[%c0_18, %c0_19] : memref<8x512xf32, #tpu.memory_space<vmem>>, vector<8x512xf32>
    %19 = arith.mulf %17, %3 : vector<8x512xf32>
    %20 = arith.addf %18, %19 : vector<8x512xf32>
    %c0_20 = arith.constant 0 : index
    %c0_21 = arith.constant 0 : index
    %21 = vector.load %arg10[%c0_20, %c0_21] : memref<8x512xf32, #tpu.memory_space<vmem>>, vector<8x512xf32>
    tpu.vector_store %arg10[%c0_20, %c0_21], %20 {strides = array<i32>} : memref<8x512xf32, #tpu.memory_space<vmem>>, vector<8x512xf32>,
    %c0_22 = arith.constant 0 : index
    %c0_23 = arith.constant 0 : index
    %22 = vector.load %arg11[%c0_22, %c0_23] : memref<8x512xf32, #tpu.memory_space<vmem>>, vector<8x512xf32>
    %23 = arith.mulf %17, %17 : vector<8x512xf32>
    %24 = arith.addf %22, %23 : vector<8x512xf32>
    %c0_24 = arith.constant 0 : index
    %c0_25 = arith.constant 0 : index
    %25 = vector.load %arg11[%c0_24, %c0_25] : memref<8x512xf32, #tpu.memory_space<vmem>>, vector<8x512xf32>
    tpu.vector_store %arg11[%c0_24, %c0_25], %24 {strides = array<i32>} : memref<8x512xf32, #tpu.memory_space<vmem>>, vector<8x512xf32>,
    %c0_i32_26 = arith.constant 0 : i32
    %26 = arith.cmpi eq, %arg2, %c0_i32_26 : i32
    %27 = arith.extui %26 : i1 to i32
    %c0_i32_27 = arith.constant 0 : i32
    %28 = arith.cmpi ne, %27, %c0_i32_27 : i32
    scf.if %28 {
      %c0_28 = arith.constant 0 : index
      %c0_29 = arith.constant 0 : index
      %29 = vector.load %arg7[%c0_28, %c0_29] : memref<8x512xf32, #tpu.memory_space<vmem>>, vector<8x512xf32>
      %cst = arith.constant dense<0.000000e+00> : vector<8xf32>
      %30 = vector.multi_reduction <add>, %29, %cst [1] : vector<8x512xf32> to vector<8xf32>
      %31 = vector.shape_cast %30 : vector<8xf32> to vector<8x1xf32>
      %c0_30 = arith.constant 0 : index
      %c0_31 = arith.constant 0 : index
      %32 = vector.load %arg8[%c0_30, %c0_31] : memref<8x512xf32, #tpu.memory_space<vmem>>, vector<8x512xf32>
      %cst_32 = arith.constant dense<0.000000e+00> : vector<8xf32>
      %33 = vector.multi_reduction <add>, %32, %cst_32 [1] : vector<8x512xf32> to vector<8xf32>
      %34 = vector.shape_cast %33 : vector<8xf32> to vector<8x1xf32>
      %c0_33 = arith.constant 0 : index
      %c0_34 = arith.constant 0 : index
      %35 = vector.load %arg9[%c0_33, %c0_34] : memref<8x512xf32, #tpu.memory_space<vmem>>, vector<8x512xf32>
      %cst_35 = arith.constant dense<0.000000e+00> : vector<8xf32>
      %36 = vector.multi_reduction <add>, %35, %cst_35 [1] : vector<8x512xf32> to vector<8xf32>
      %37 = vector.shape_cast %36 : vector<8xf32> to vector<8x1xf32>
      %c0_36 = arith.constant 0 : index
      %c0_37 = arith.constant 0 : index
      %38 = vector.load %arg10[%c0_36, %c0_37] : memref<8x512xf32, #tpu.memory_space<vmem>>, vector<8x512xf32>
      %cst_38 = arith.constant dense<0.000000e+00> : vector<8xf32>
      %39 = vector.multi_reduction <add>, %38, %cst_38 [1] : vector<8x512xf32> to vector<8xf32>
      %40 = vector.shape_cast %39 : vector<8xf32> to vector<8x1xf32>
      %c0_39 = arith.constant 0 : index
      %c0_40 = arith.constant 0 : index
      %41 = vector.load %arg11[%c0_39, %c0_40] : memref<8x512xf32, #tpu.memory_space<vmem>>, vector<8x512xf32>
      %cst_41 = arith.constant dense<0.000000e+00> : vector<8xf32>
      %42 = vector.multi_reduction <add>, %41, %cst_41 [1] : vector<8x512xf32> to vector<8xf32>
      %43 = vector.shape_cast %42 : vector<8xf32> to vector<8x1xf32>
      %44 = tpu.concatenate %31, %34, %37, %40, %43 in 1 : vector<8x1xf32>, vector<8x1xf32>, vector<8x1xf32>, vector<8x1xf32>, vector<8x1xf32> -> vector<8x5xf32>
      %45 = vector.shape_cast %44 : vector<8x5xf32> to vector<1x8x5xf32>
      %c0_42 = arith.constant 0 : index
      %c0_43 = arith.constant 0 : index
      %c0_44 = arith.constant 0 : index
      %46 = vector.load %arg6[%c0_42, %c0_43, %c0_44] : memref<1x8x5xf32, #tpu.memory_space<vmem>>, vector<1x8x5xf32>
      tpu.vector_store %arg6[%c0_42, %c0_43, %c0_44], %45 {strides = array<i32>} : memref<1x8x5xf32, #tpu.memory_space<vmem>>, vector<1x8x5xf32>,
    } else {
    }
    return
  }
  func.func @transform_0(%arg0: i32, %arg1: i32, %arg2: i32) -> (i32, i32) {
    %c1_i32 = arith.constant 1 : i32
    %0 = arith.muli %arg0, %c1_i32 : i32
    %1 = arith.addi %0, %arg2 : i32
    %c0_i32 = arith.constant 0 : i32
    return %arg1, %1 : i32, i32
  }
  func.func @transform_1(%arg0: i32, %arg1: i32, %arg2: i32) -> (i32, i32) {
    %c1_i32 = arith.constant 1 : i32
    %0 = arith.muli %arg0, %c1_i32 : i32
    %1 = arith.addi %0, %arg2 : i32
    %c0_i32 = arith.constant 0 : i32
    return %arg1, %1 : i32, i32
  }
  func.func @transform_2(%arg0: i32, %arg1: i32, %arg2: i32) -> (i32, i32) {
    %c1_i32 = arith.constant 1 : i32
    %0 = arith.muli %arg0, %c1_i32 : i32
    %1 = arith.addi %0, %arg2 : i32
    %c0_i32 = arith.constant 0 : i32
    return %arg1, %1 : i32, i32
  }
  func.func @transform_3(%arg0: i32, %arg1: i32, %arg2: i32) -> (i32, i32, i32) {
    %c0_i32 = arith.constant 0 : i32
    %c0_i32_0 = arith.constant 0 : i32
    return %arg0, %arg1, %c0_i32 : i32, i32, i32
  }
}

</mosaic_0001>

<bundles_post_ra>
// kernel: _dice_loss_impl.1
= control target key start
LH: loop header
LB: loop body
LE: loop exit
PB: predicated region body
PF: predicated region fallthrough
CT: control target
= control target key end

     0   :  { %vm244_vm0 = vcmask 7168   ;;  %vm246_vm1 = vcmask 15360   ;;  %vm248_vm2 = vcmask 23552   ;;  %vm250_vm3 = vcmask 31744   ;;  %s335_s0 = inlined_call_operand.vmem [shape: f32[8,512], index: 0, kind: input, shape index: {}]   ;;  %s336_s1 = inlined_call_operand.vmem [shape: f32[8,512], index: 1, kind: input, shape index: {}]   ;;  %s337_s2 = inlined_call_operand.vmem [shape: f32[8,512], index: 2, kind: input, shape index: {}]   ;;  %s338_s3 = inlined_call_operand.vmem [shape: f32[1,8,5], index: 3, kind: output, shape index: {}]  }
   0x1   :  { %v104_v0 = vld [vmem:[%s335_s0] sm:$0xff]  ;;  %v105_v1 = vld [vmem:[%s335_s0 + $0x8] sm:$0xff]  ;;  %v106_v2 = vld [vmem:[%s335_s0 + $0x10] sm:$0xff]  ;;  %vm252_vm4 = vcmask 39936  }
   0x2   :  { %v107_v3 = vld [vmem:[%s335_s0 + $0x18] sm:$0xff]  ;;  %v112_v4 = vmul.f32 %v104_v0, %v104_v0  ;;  %v113_v5 = vmul.f32 %v105_v1, %v105_v1  ;;  %v114_v6 = vmul.f32 %v106_v2, %v106_v2  ;;  %v124_v7 = vld [vmem:[%s336_s1] sm:$0xff]  ;;  %v125_v8 = vld [vmem:[%s336_s1 + $0x8] sm:$0xff] }
   0x3   :  { %v115_v9 = vmul.f32 %v107_v3, %v107_v3  ;;  %v126_v10 = vld [vmem:[%s336_s1 + $0x10] sm:$0xff]  ;;  %v127_v11 = vld [vmem:[%s336_s1 + $0x18] sm:$0xff]  ;;  %v148_v12 = vmul.f32 %v124_v7, %v124_v7  ;;  %v149_v13 = vmul.f32 %v125_v8, %v125_v8  ;;  %v132_v14 = vmul.f32 %v124_v7, %v104_v0  ;;  %v160_v15 = vld [vmem:[%s337_s2] sm:$0xff] }
   0x4   :  { %v203_v16 = vadd.f32 %v113_v5, %v112_v4  ;;  %v150_v17 = vmul.f32 %v126_v10, %v126_v10  ;;  %v151_v18 = vmul.f32 %v127_v11, %v127_v11  ;;  %v133_v19 = vmul.f32 %v125_v8, %v105_v1  ;;  %v161_v20 = vld [vmem:[%s337_s2 + $0x8] sm:$0xff]  ;;  %v162_v21 = vld [vmem:[%s337_s2 + $0x10] sm:$0xff]  ;;  %v163_v22 = vld [vmem:[%s337_s2 + $0x18] sm:$0xff] }
   0x5   :  { %v221_v23 = vadd.f32 %v149_v13, %v148_v12  ;;  %v134_v24 = vmul.f32 %v126_v10, %v106_v2  ;;  %v135_v25 = vmul.f32 %v127_v11, %v107_v3  ;;  %v168_v26 = vmul.f32 %v160_v15, %v104_v0 }
   0x6   :  { %v204_v27 = vadd.f32 %v203_v16, %v114_v6  ;;  %v212_v28 = vadd.f32 %v133_v19, %v132_v14  ;;  %v169_v29 = vmul.f32 %v161_v20, %v105_v1  ;;  %v170_v30 = vmul.f32 %v162_v21, %v106_v2 }
   0x7   :  { %v222_v31 = vadd.f32 %v221_v23, %v150_v17  ;;  %v171_v32 = vmul.f32 %v163_v22, %v107_v3  ;;  %v184_v33 = vmul.f32 %v160_v15, %v160_v15  ;;  %v185_v34 = vmul.f32 %v161_v20, %v161_v20 }
   0x8   :  { %v205_v35 = vadd.f32 %v204_v27, %v115_v9  ;;  %v213_v36 = vadd.f32 %v212_v28, %v134_v24  ;;  %v230_v37 = vadd.f32 %v169_v29, %v168_v26  ;;  %v186_v38 = vmul.f32 %v162_v21, %v162_v21 }
   0x9   :  { %v223_v39 = vadd.f32 %v222_v31, %v151_v18  ;;  %v239_v40 = vadd.f32 %v185_v34, %v184_v33  ;;  %v187_v43 = vmul.f32 %v163_v22, %v163_v22 }
   0xa   :  { %206 = vadd.xlane.f32.xlu0 %v205_v35  ;;  %v214_v41 = vadd.f32 %v213_v36, %v135_v25  ;;  %v231_v42 = vadd.f32 %v230_v37, %v170_v30 }
   0xb   :  { %224 = vadd.xlane.f32.xlu1 %v223_v39  ;;  %v240_v44 = vadd.f32 %v239_v40, %v186_v38 }
   0xc   :  { %v232_v45 = vadd.f32 %v231_v42, %v171_v32 }
   0xd   :  { %v241_v46 = vadd.f32 %v240_v44, %v187_v43 }
   0xe   :  { %215 = vadd.xlane.f32.xlu0 %v214_v41 }
   0xf   :  { %233 = vadd.xlane.f32.xlu1 %v232_v45 }
  0x12   :  { %242 = vadd.xlane.f32.xlu0 %v241_v46 }
  0x97   :  { %v207_v47 = vpop.xlane.xlu0 %206 }
  0x98   :  { %v225_v48 = vpop.xlane.xlu1 %224 }
  0x9b   :  { %v216_v49 = vpop.xlane.xlu0 %215 }
  0x9c   :  { %v245_v50 = vsel %vm244_vm0, %v207_v47, %v216_v49  ;;  %v234_v51 = vpop.xlane.xlu1 %233 }
  0x9d   :  { %v247_v52 = vsel %vm246_vm1, %v245_v50, %v225_v48 }
  0x9e   :  { %v249_v53 = vsel %vm248_vm2, %v247_v52, %v234_v51 }
  0x9f   :  { %v243_v54 = vpop.xlane.xlu0 %242 }
  0xa0   :  { %v251_v55 = vsel %vm250_vm3, %v249_v53, %v243_v54 }
  0xa1   :  { %253 = vst.msk [vmem:[%s338_s3] sm:$0xff] %vm252_vm4, %v251_v55 }

</bundles_post_ra>
